<compile_context>
chip_gen: v6e
topology: v6e:2x2x1
jax: 0.10.0
libtpu: 0.0.40
codegen_flags: <defaults>
</compile_context>

<pallas_src>
import jax
import jax.numpy as jnp
from jax.experimental import pallas as pl
from jax.experimental.pallas import tpu as pltpu

H, W = 28, 24          # input spatial dims implied by Linear(1408, ...) with 64ch * 22w
KH, KW = 28, 3
COUT = 64
WOUT = W - KW + 1      # 22
FLAT = COUT * WOUT     # 1408
KIN = H * W            # 672  (fused contraction dim)
DOUT = 512


def _round_up(a, b):
    return (a + b - 1) // b * b


def fuse_params(conv_w, conv_b, lin_w, lin_b):
    """Fold conv + torch-style view(N,-1) flatten into the linear layer (done ONCE)."""
    lin_w_r = lin_w.reshape(DOUT, COUT, WOUT)                  # [o, c, w] = lin_w[o, c*22+w]
    wf = jnp.zeros((H, W, DOUT), jnp.float32)
    for kw in range(KW):
        # contrib[h, w, o] = sum_c conv_w[c,0,h,kw] * lin_w[o, c*22+w]; lands at column j=w+kw
        contrib = jnp.einsum('ch,ocw->hwo', conv_w[:, 0, :, kw], lin_w_r)
        wf = wf.at[:, kw:kw + WOUT, :].add(contrib)
    wf = wf.reshape(KIN, DOUT)                                  # (672, 512)
    bf = jnp.repeat(conv_b, WOUT) @ lin_w.T + lin_b             # (512,)
    # Weight in bf16 for the MXU; accumulation stays f32 in-kernel, bias added in f32.
    return wf.astype(jnp.bfloat16), bf.reshape(1, DOUT).astype(jnp.float32)


def fused_matmul_kernel(x_ref, w_ref, b_ref, o_ref):
    # x_ref: (TILE_M, 672) f32   w_ref: (672, 512) bf16   b_ref: (1, 512) f32
    # o_ref: (TILE_M, 512) bf16
    x = x_ref[...].astype(jnp.bfloat16)                         # VPU cast, hides under DMA/MXU
    acc = jnp.dot(x, w_ref[...], preferred_element_type=jnp.float32)
    o_ref[...] = (acc + b_ref[...]).astype(o_ref.dtype)


def _choose_tile_m(n):
    if n <= 256:
        # f32 input rows -> 8-row sublane granularity is the clean minimum
        return _round_up(n, 8)
    # large batches: 256-1024 row tiles, and keep >= 2 grid steps so the "parallel"
    # batch axis shards across both TensorCores on v7x (no-op cost on v5e/v6e)
    return min(1024, _round_up(pl.cdiv(n, 2), 256))


def net_forward(x, w_fused, b_fused):
    # TODO(synk): Dropout(0.2) is identity at inference; training-mode RNG mask not implemented.
    n = x.shape[0]
    x_flat = x.reshape(n, KIN)                                  # stays f32; cast in-kernel
    tile_m = _choose_tile_m(n)
    grid = (pl.cdiv(n, tile_m),)                                # ragged last block masked by Pallas

    return pl.pallas_call(
        fused_matmul_kernel,
        out_shape=jax.ShapeDtypeStruct((n, DOUT), jnp.bfloat16),
        grid=grid,
        in_specs=[
            pl.BlockSpec((tile_m, KIN), lambda i: (i, 0)),
            pl.BlockSpec((KIN, DOUT), lambda i: (0, 0)),
            pl.BlockSpec((1, DOUT), lambda i: (0, 0)),
        ],
        out_specs=pl.BlockSpec((tile_m, DOUT), lambda i: (i, 0)),
        compiler_params=pltpu.CompilerParams(dimension_semantics=("parallel",)),
    )(x_flat, w_fused, b_fused)


def ref_forward(x, conv_w, conv_b, lin_w, lin_b):
    # plain-JAX f32 reference mirroring the PyTorch forward exactly
    xs = x[:, 0]                                                # (N, 28, 24)
    cols = jnp.stack([xs[:, :, w:w + KW] for w in range(WOUT)], axis=1)   # (N,22,28,3)
    conv = jnp.einsum('nwhk,chk->ncw', cols, conv_w[:, 0]) + conv_b[None, :, None]
    flat = conv.reshape(x.shape[0], -1)                         # channel-major, = torch view
    return flat @ lin_w.T + lin_b[None, :]


if __name__ == "__main__":
    key = jax.random.PRNGKey(0)
    k_x, k_cw, k_cb, k_lw, k_lb = jax.random.split(key, 5)

    N = 2
    x = jax.random.normal(k_x, (N, 1, H, W), dtype=jnp.float32)
    conv_w = jax.random.normal(k_cw, (COUT, 1, KH, KW), dtype=jnp.float32) * 0.05
    conv_b = jax.random.normal(k_cb, (COUT,), dtype=jnp.float32) * 0.05
    lin_w = jax.random.normal(k_lw, (DOUT, FLAT), dtype=jnp.float32) * 0.02
    lin_b = jax.random.normal(k_lb, (DOUT,), dtype=jnp.float32) * 0.02

    # weight folding hoisted out of the per-call forward path (done once per model)
    w_fused, b_fused = jax.block_until_ready(fuse_params(conv_w, conv_b, lin_w, lin_b))

    out = net_forward(x, w_fused, b_fused)
    out = jax.block_until_ready(out)

    ref = ref_forward(x, conv_w, conv_b, lin_w, lin_b)
    assert out.shape == (N, DOUT)
    assert out.dtype == jnp.bfloat16
    assert jnp.allclose(out.astype(jnp.float32), ref, rtol=2e-2, atol=2e-2), "mismatch vs reference"

    print("KERNEL_OK")
</pallas_src>

<mosaic_0001>
module attributes {stable_mosaic.version = 11 : i64} {
  func.func @fused_matmul_kernel(%arg0: i32, %arg1: memref<8x672xf32, #tpu.memory_space<vmem>>, %arg2: memref<672x512xbf16, #tpu.memory_space<vmem>>, %arg3: memref<1x512xf32, #tpu.memory_space<vmem>>, %arg4: memref<8x512xbf16, #tpu.memory_space<vmem>>) attributes {dimension_semantics = [#tpu.dimension_semantics<parallel>], iteration_bounds = array<i64: 1>, scalar_prefetch = 0 : i64, scratch_operands = 0 : i64, tpu.core_type = #tpu.core_type<tc>, window_params = [{transform_indices = @transform_0, window_bounds = array<i64: 8, 672>}, {pipeline_mode = #tpu.pipeline_mode<synchronous>, transform_indices = @transform_1, window_bounds = array<i64: 672, 512>}, {pipeline_mode = #tpu.pipeline_mode<synchronous>, transform_indices = @transform_2, window_bounds = array<i64: 1, 512>}, {transform_indices = @transform_3, window_bounds = array<i64: 8, 512>}]} {
    %c0 = arith.constant 0 : index
    %c0_0 = arith.constant 0 : index
    %0 = vector.load %arg1[%c0, %c0_0] : memref<8x672xf32, #tpu.memory_space<vmem>>, vector<8x672xf32>
    %1 = arith.truncf %0 : vector<8x672xf32> to vector<8x672xbf16>
    %c0_1 = arith.constant 0 : index
    %c0_2 = arith.constant 0 : index
    %2 = vector.load %arg2[%c0_1, %c0_2] : memref<672x512xbf16, #tpu.memory_space<vmem>>, vector<672x512xbf16>
    %cst = arith.constant dense<0.000000e+00> : vector<8x512xf32>
    %3 = tpu.matmul %1, %2, %cst {dimension_numbers = #tpu.dot_dimension_numbers<[1], [0], [0], [1], [0, 0, 1, 1], [], []>} : vector<8x672xbf16>, vector<672x512xbf16>, vector<8x512xf32> -> vector<8x512xf32>
    %c0_3 = arith.constant 0 : index
    %c0_4 = arith.constant 0 : index
    %4 = vector.load %arg3[%c0_3, %c0_4] : memref<1x512xf32, #tpu.memory_space<vmem>>, vector<1x512xf32>
    %5 = vector.broadcast %4 : vector<1x512xf32> to vector<8x512xf32>
    %6 = arith.addf %3, %5 : vector<8x512xf32>
    %7 = arith.truncf %6 : vector<8x512xf32> to vector<8x512xbf16>
    %c0_5 = arith.constant 0 : index
    %c0_6 = arith.constant 0 : index
    %8 = vector.load %arg4[%c0_5, %c0_6] : memref<8x512xbf16, #tpu.memory_space<vmem>>, vector<8x512xbf16>
    tpu.vector_store %arg4[%c0_5, %c0_6], %7 {strides = array<i32>} : memref<8x512xbf16, #tpu.memory_space<vmem>>, vector<8x512xbf16>,
    return
  }
  func.func @transform_0(%arg0: i32) -> (i32, i32) {
    %c0_i32 = arith.constant 0 : i32
    %c0_i32_0 = arith.constant 0 : i32
    return %arg0, %c0_i32 : i32, i32
  }
  func.func @transform_1(%arg0: i32) -> (i32, i32) {
    %c0_i32 = arith.constant 0 : i32
    %c0_i32_0 = arith.constant 0 : i32
    %c0_i32_1 = arith.constant 0 : i32
    return %c0_i32, %c0_i32_0 : i32, i32
  }
  func.func @transform_2(%arg0: i32) -> (i32, i32) {
    %c0_i32 = arith.constant 0 : i32
    %c0_i32_0 = arith.constant 0 : i32
    %c0_i32_1 = arith.constant 0 : i32
    return %c0_i32, %c0_i32_0 : i32, i32
  }
  func.func @transform_3(%arg0: i32) -> (i32, i32) {
    %c0_i32 = arith.constant 0 : i32
    %c0_i32_0 = arith.constant 0 : i32
    return %arg0, %c0_i32 : i32, i32
  }
}

</mosaic_0001>

<bundles_post_ra>
// kernel: tpu_custom_call.1
= control target key start
LH: loop header
LB: loop body
LE: loop exit
PB: predicated region body
PF: predicated region fallthrough
CT: control target
= control target key end

     0   :  { %8 = vsyncpa [#allocation3], 0  ;;  %s2099_s0 = inlined_call_operand.hbm [shape: f32[2,672], index: 0, kind: input, shape index: {}]   ;;  %s2100_s1 = inlined_call_operand.hbm [shape: bf16[672,512], index: 1, kind: input, shape index: {}]   ;;  %s2101_s2 = inlined_call_operand.hbm [shape: f32[1,512], index: 2, kind: input, shape index: {}]   ;;  %s2102_s3 = inlined_call_operand.hbm [shape: bf16[2,512], index: 3, kind: output, shape index: {}]  }
   0x1   :  { %9 = vsyncpa [#allocation6], 0 }
   0x2   :  { %10 = vsyncpa [#allocation4], 0 }
   0x3   :  { %15 = vsyncadd [#allocation3], 576  ;;  %s2017_s12 = smov [#allocation5]  }
   0x4   :  { %s28_s13 = sshll.u32 %s2017_s12, 4  ;;  %s29_s13 = int_to_ptr.vmem [resolvable:$true] %s28_s13 }
   0x5   :  { %s1939_s14 = scalar_lea.vmem %s29_s13, 21504  ;;  %p1944_p1 = scmp.lt.s32.totalorder %s29_s13, %s29_s13 }
   0x6   :  { %p1940_p0 = scmp.ne.s32.totalorder %s29_s13, %s1939_s14  ;;  %p1945_p2 = scmp.lt.s32.totalorder %s1939_s14, %s1939_s14 }
   0x8   :  { %p1946_p3 = por %p1945_p2, %p1944_p1 }
   0xa   :  { %p1947_p4 = pnand %p1946_p3, %p1940_p0 }
   0xc   :  { %1950 = shalt.err (!%p1947_p4)
}
   0xd   :  { %s2018_s15 = smov 256   ;;  %s2019_s16 = smov 16  }
   0xe   :  { %34 = dma.hbm_to_vmem [thread:$0]  %s2100_s1, 21504, %s29_s13, [#allocation6], %s2018_s15, %s2018_s15, %s2019_s16  }
   0xf   :  { %s2020_s19 = smov [#allocation2]  }
  0x10   :  { %s16_s20 = sshll.u32 %s2020_s19, 4  ;;  %s17_s20 = int_to_ptr.vmem [resolvable:$true] %s16_s20 }
  0x11   :  { %s1959_s21 = scalar_lea.vmem %s17_s20, 192  ;;  %s1963_s22 = scalar_lea.vmem %s17_s20, 768 }
  0x12   :  { %p1960_p5 = scmp.ne.s32.totalorder %s17_s20, %s1959_s21  ;;  %p1964_p6 = scmp.lt.s32.totalorder %s17_s20, %s17_s20 }
  0x13   :  { %p1965_p7 = scmp.lt.s32.totalorder %s1963_s22, %s1959_s21 }
  0x15   :  { %p1966_p8 = por %p1965_p7, %p1964_p6 }
  0x17   :  { %p1967_p9 = pnand %p1966_p8, %p1960_p5 }
  0x19   :  { %1970 = shalt.err (!%p1967_p9)
}
  0x1a   :  { %s2021_s23 = smov 192   ;;  %s2022_s24 = smov 12  }
  0x1b   :  { %22 = dma.hbm_to_vmem [thread:$0]  %s2099_s0, 192, %s17_s20, [#allocation3], %s2021_s23, %s2021_s23, %s2022_s24  }
  0x1c   :  { %s2023_s27 = smov [#allocation7]  }
  0x1d   :  { %s41_s28 = sshll.u32 %s2023_s27, 4  ;;  %s42_s28 = int_to_ptr.vmem [resolvable:$true] %s41_s28 }
  0x1e   :  { %s1979_s1 = scalar_lea.vmem %s42_s28, 64  ;;  %p1984_p11 = scmp.lt.s32.totalorder %s42_s28, %s42_s28 }
  0x1f   :  { %p1980_p10 = scmp.ne.s32.totalorder %s42_s28, %s1979_s1  ;;  %p1985_p12 = scmp.lt.s32.totalorder %s1979_s1, %s1979_s1 }
  0x21   :  { %p1986_p13 = por %p1985_p12, %p1984_p11 }
  0x23   :  { %p1987_p0 = pnand %p1986_p13, %p1980_p10 }
  0x25   :  { %1990 = shalt.err (!%p1987_p0)
}
  0x26   :  { %44 = dma.hbm_to_vmem [thread:$0]  %s2101_s2, 64, %s42_s28, [#allocation6]  }
  0x27   :  { %2011 = dma.done.wait [#allocation3], 768  }
  0x28   :  { %2012 = vsyncadd [#allocation3], 4294966528 }
  0x29   :  { %2013 = dma.done.wait [#allocation6], 21568  }
  0x2a   :  { %2014 = vsyncadd [#allocation6], 4294945728  ;;  %v1671_v0 = vld [vmem:[#allocation5 + $0xe4] ss:$16 sps:$4 sm:$0xff]   ;;  %v1675_v2 = vld [vmem:[#allocation5 + $0xe0] ss:$16 sps:$4 sm:$0xff]   ;;  %v78_v40 = vlaneseq }
  0x2b   :  { %v1673_v1 = vld [vmem:[#allocation5 + $0x2e4] ss:$16 sps:$4 sm:$0xff]   ;;  %1171 = vmatprep.subr.bf16.mxu0 %v1671_v0  ;;  %v1676_v3 = vld [vmem:[#allocation5 + $0x2e0] ss:$16 sps:$4 sm:$0xff]   ;;  %v2024_v38 = vmov 1983009808  }
  0x2c   :  { %1212 = vmatprep.subr.bf16.mxu1 %v1673_v1  ;;  %v1677_v4 = vld [vmem:[#allocation5 + $0xc4] ss:$16 sps:$4 sm:$0xff]   ;;  %1172 = vmatpush1.bf16.msra.mxu0 %v1675_v2  ;;  %v1681_v6 = vld [vmem:[#allocation5 + $0xc0] ss:$16 sps:$4 sm:$0xff]   ;;  %v76_v39 = vunpack.c.l.s4 %v2024_v38  ;;  %v2058_v46 = vshrl.u32 %v78_v40, 7  ;;  %vm1167_vm0 = vcmask 261120  }
  0x2d   :  { %1213 = vmatpush1.bf16.msra.mxu1 %v1676_v3  ;;  %v1679_v5 = vld [vmem:[#allocation5 + $0x2c4] ss:$16 sps:$4 sm:$0xff]   ;;  %1173 = vmatprep.subr.bf16.mxu0 %v1677_v4  ;;  %v1682_v7 = vld [vmem:[#allocation5 + $0x2c0] ss:$16 sps:$4 sm:$0xff]   ;;  %v1772_v59 = vld [vmem:[#allocation2 + $0x1c] ss:$12 sps:$4 sm:$0xff]  }
  0x2e   :  { %1214 = vmatprep.subr.bf16.mxu1 %v1679_v5  ;;  %v1683_v8 = vld [vmem:[#allocation5 + $0xa4] ss:$16 sps:$4 sm:$0xff]   ;;  %v1687_v10 = vld [vmem:[#allocation5 + $0xa0] ss:$16 sps:$4 sm:$0xff]   ;;  %v77_v45 = vunpack.c.0.s8 %v76_v39 }
  0x2f   :  { %v1685_v9 = vld [vmem:[#allocation5 + $0x2a4] ss:$16 sps:$4 sm:$0xff]   ;;  %v1688_v11 = vld [vmem:[#allocation5 + $0x2a0] ss:$16 sps:$4 sm:$0xff]  }
  0x30   :  { %1174 = vmatpush1.bf16.msra.mxu0 %v1681_v6  ;;  %v1689_v12 = vld [vmem:[#allocation5 + $0x84] ss:$16 sps:$4 sm:$0xff]   ;;  %v1693_v14 = vld [vmem:[#allocation5 + $0x80] ss:$16 sps:$4 sm:$0xff]   ;;  %v2061_v53 = vsub.s32 %v77_v45, %v2058_v46 }
  0x31   :  { %1215 = vmatpush1.bf16.msra.mxu1 %v1682_v7  ;;  %1175 = vmatprep.subr.bf16.mxu0 %v1683_v8  ;;  %v1691_v13 = vld [vmem:[#allocation5 + $0x284] ss:$16 sps:$4 sm:$0xff]   ;;  %v1694_v15 = vld [vmem:[#allocation5 + $0x280] ss:$16 sps:$4 sm:$0xff]  }
  0x32   :  { %1216 = vmatprep.subr.bf16.mxu1 %v1685_v9  ;;  %v1695_v16 = vld [vmem:[#allocation5 + $0x64] ss:$16 sps:$4 sm:$0xff]   ;;  %v1699_v18 = vld [vmem:[#allocation5 + $0x60] ss:$16 sps:$4 sm:$0xff]   ;;  %v102_v1 = vrot.slane %v1772_v59, %v2061_v53 }
  0x33   :  { %v1697_v17 = vld [vmem:[#allocation5 + $0x264] ss:$16 sps:$4 sm:$0xff]   ;;  %v1700_v19 = vld [vmem:[#allocation5 + $0x260] ss:$16 sps:$4 sm:$0xff]  }
  0x34   :  { %1176 = vmatpush1.bf16.msra.mxu0 %v1687_v10  ;;  %v1701_v20 = vld [vmem:[#allocation5 + $0x44] ss:$16 sps:$4 sm:$0xff]   ;;  %v1705_v22 = vld [vmem:[#allocation5 + $0x40] ss:$16 sps:$4 sm:$0xff]  }
  0x35   :  { %1217 = vmatpush1.bf16.msra.mxu1 %v1688_v11  ;;  %1177 = vmatprep.subr.bf16.mxu0 %v1689_v12  ;;  %v1703_v21 = vld [vmem:[#allocation5 + $0x244] ss:$16 sps:$4 sm:$0xff]   ;;  %v1706_v23 = vld [vmem:[#allocation5 + $0x240] ss:$16 sps:$4 sm:$0xff]  }
  0x36   :  { %1218 = vmatprep.subr.bf16.mxu1 %v1691_v13  ;;  %v1707_v24 = vld [vmem:[#allocation5 + $0x24] ss:$16 sps:$4 sm:$0xff]   ;;  %v1711_v26 = vld [vmem:[#allocation5 + $0x20] ss:$16 sps:$4 sm:$0xff]  }
  0x37   :  { %v1709_v25 = vld [vmem:[#allocation5 + $0x224] ss:$16 sps:$4 sm:$0xff]   ;;  %v1712_v27 = vld [vmem:[#allocation5 + $0x220] ss:$16 sps:$4 sm:$0xff]  }
  0x38   :  { %1178 = vmatpush1.bf16.msra.mxu0 %v1693_v14  ;;  %v1713_v28 = vld [vmem:[#allocation5 + $0x4] ss:$16 sps:$4 sm:$0xff]   ;;  %v1717_v30 = vld [vmem:[#allocation5] ss:$16 sps:$4 sm:$0xff]  }
  0x39   :  { %1219 = vmatpush1.bf16.msra.mxu1 %v1694_v15  ;;  %1179 = vmatprep.subr.bf16.mxu0 %v1695_v16  ;;  %v1715_v29 = vld [vmem:[#allocation5 + $0x204] ss:$16 sps:$4 sm:$0xff]   ;;  %v1718_v31 = vld [vmem:[#allocation5 + $0x200] ss:$16 sps:$4 sm:$0xff]  }
  0x3a   :  { %1220 = vmatprep.subr.bf16.mxu1 %v1697_v17  ;;  %v1719_v32 = vld [vmem:[#allocation5 + $0x1e4] ss:$16 sps:$4 sm:$0xff]   ;;  %v1723_v34 = vld [vmem:[#allocation5 + $0x1e0] ss:$16 sps:$4 sm:$0xff]  }
  0x3b   :  { %v1721_v33 = vld [vmem:[#allocation5 + $0x3e4] ss:$16 sps:$4 sm:$0xff]   ;;  %v1724_v35 = vld [vmem:[#allocation5 + $0x3e0] ss:$16 sps:$4 sm:$0xff]  }
  0x3c   :  { %1180 = vmatpush1.bf16.msra.mxu0 %v1699_v18  ;;  %v1725_v36 = vld [vmem:[#allocation5 + $0x1c4] ss:$16 sps:$4 sm:$0xff]   ;;  %v1729_v41 = vld [vmem:[#allocation5 + $0x1c0] ss:$16 sps:$4 sm:$0xff]  }
  0x3d   :  { %1221 = vmatpush1.bf16.msra.mxu1 %v1700_v19  ;;  %1181 = vmatprep.subr.bf16.mxu0 %v1701_v20  ;;  %v1727_v37 = vld [vmem:[#allocation5 + $0x3c4] ss:$16 sps:$4 sm:$0xff]   ;;  %v1730_v42 = vld [vmem:[#allocation5 + $0x3c0] ss:$16 sps:$4 sm:$0xff]  }
  0x3e   :  { %1222 = vmatprep.subr.bf16.mxu1 %v1703_v21  ;;  %v1731_v43 = vld [vmem:[#allocation5 + $0x1a4] ss:$16 sps:$4 sm:$0xff]   ;;  %v1735_v47 = vld [vmem:[#allocation5 + $0x1a0] ss:$16 sps:$4 sm:$0xff]   ;;  %v1778_v21 = vld [vmem:[#allocation5 + $0xec] ss:$16 sps:$4 sm:$0xff]  }
  0x3f   :  { %v1733_v44 = vld [vmem:[#allocation5 + $0x3a4] ss:$16 sps:$4 sm:$0xff]   ;;  %v1736_v48 = vld [vmem:[#allocation5 + $0x3a0] ss:$16 sps:$4 sm:$0xff]  }
  0x40   :  { %1182 = vmatpush1.bf16.msra.mxu0 %v1705_v22  ;;  %v1737_v49 = vld [vmem:[#allocation5 + $0x184] ss:$16 sps:$4 sm:$0xff]   ;;  %v1741_v51 = vld [vmem:[#allocation5 + $0x180] ss:$16 sps:$4 sm:$0xff]  }
  0x41   :  { %1223 = vmatpush1.bf16.msra.mxu1 %v1706_v23  ;;  %1183 = vmatprep.subr.bf16.mxu0 %v1707_v24  ;;  %v1739_v50 = vld [vmem:[#allocation5 + $0x384] ss:$16 sps:$4 sm:$0xff]   ;;  %v1742_v52 = vld [vmem:[#allocation5 + $0x380] ss:$16 sps:$4 sm:$0xff]  }
  0x42   :  { %1224 = vmatprep.subr.bf16.mxu1 %v1709_v25  ;;  %v1743_v54 = vld [vmem:[#allocation5 + $0x164] ss:$16 sps:$4 sm:$0xff]   ;;  %v1767_v56 = vld [vmem:[#allocation2] ss:$12 sps:$4 sm:$0xff]   ;;  %v1776_v25 = vld [vmem:[#allocation5 + $0xe8] ss:$16 sps:$4 sm:$0xff]  }
  0x43   :  { %v1745_v55 = vld [vmem:[#allocation5 + $0x364] ss:$16 sps:$4 sm:$0xff]   ;;  %v81_v60 = vrot.slane %v1767_v56, %v2061_v53  ;;  %v1747_v63 = vld [vmem:[#allocation5 + $0x160] ss:$16 sps:$4 sm:$0xff]   ;;  %v1812_v56 = vld [vmem:[#allocation5 + $0x28] ss:$16 sps:$4 sm:$0xff]  }
  0x44   :  { %1184 = vmatpush1.bf16.msra.mxu0 %v1711_v26  ;;  %v1769_v57 = vld [vmem:[#allocation2 + $0x18] ss:$12 sps:$4 sm:$0xff]   ;;  %v1748_v0 = vld [vmem:[#allocation5 + $0x360] ss:$16 sps:$4 sm:$0xff]  }
  0x45   :  { %1225 = vmatpush1.bf16.msra.mxu1 %v1712_v27  ;;  %1185 = vmatprep.subr.bf16.mxu0 %v1713_v28  ;;  %v1771_v58 = vld [vmem:[#allocation2 + $0x4] ss:$12 sps:$4 sm:$0xff]   ;;  %v95_v61 = vrot.slane %v1769_v57, %v2061_v53  ;;  %v1784_v27 = vld [vmem:[#allocation5 + $0xcc] ss:$16 sps:$4 sm:$0xff]  }
  0x46   :  { %1226 = vmatprep.subr.bf16.mxu1 %v1715_v29  ;;  %v88_v62 = vrot.slane %v1771_v58, %v2061_v53  ;;  %v1749_v2 = vld [vmem:[#allocation5 + $0x144] ss:$16 sps:$4 sm:$0xff]   ;;  %v1753_v7 = vld [vmem:[#allocation5 + $0x140] ss:$16 sps:$4 sm:$0xff]   ;;  %v1782_v29 = vld [vmem:[#allocation5 + $0xc8] ss:$16 sps:$4 sm:$0xff]  }
  0x47   :  { %v104_v3 = vcombine.high %v81_v60, %v95_v61  ;;  %v1751_v4 = vld [vmem:[#allocation5 + $0x344] ss:$16 sps:$4 sm:$0xff]   ;;  %v1754_v8 = vld [vmem:[#allocation5 + $0x340] ss:$16 sps:$4 sm:$0xff]   ;;  %v103_v18 = vcombine.low %v81_v60, %v95_v61  ;;  %v1820_v58 = vld [vmem:[#allocation5 + $0xc] ss:$16 sps:$4 sm:$0xff]  }
  0x48   :  { %1186 = vmatpush1.bf16.msra.mxu0 %v1717_v30  ;;  %v106_v5 = vcombine.high %v88_v62, %v102_v1  ;;  %v1755_v10 = vld [vmem:[#allocation5 + $0x124] ss:$16 sps:$4 sm:$0xff]   ;;  %v1759_v12 = vld [vmem:[#allocation5 + $0x120] ss:$16 sps:$4 sm:$0xff]   ;;  %v105_v19 = vcombine.low %v88_v62, %v102_v1  ;;  %v1818_v60 = vld [vmem:[#allocation5 + $0x8] ss:$16 sps:$4 sm:$0xff]  }
  0x49   :  { %1227 = vmatpush1.bf16.msra.mxu1 %v1718_v31  ;;  %1187 = vmatprep.subr.bf16.mxu0 %v1719_v32  ;;  %v132_v6 = vpack.c.bf16 %v104_v3, %v104_v3  ;;  %v1757_v11 = vld [vmem:[#allocation5 + $0x324] ss:$16 sps:$4 sm:$0xff]   ;;  %v1760_v13 = vld [vmem:[#allocation5 + $0x320] ss:$16 sps:$4 sm:$0xff]   ;;  %v2070_v22 = vpack.c.bf16 %v103_v18, %v103_v18  ;;  %v1790_v31 = vld [vmem:[#allocation5 + $0xac] ss:$16 sps:$4 sm:$0xff]  }
  0x4a   :  { %1228 = vmatprep.subr.bf16.mxu1 %v1721_v33  ;;  %v2067_v9 = vpack.c.bf16 %v106_v5, %v106_v5  ;;  %v1761_v14 = vld [vmem:[#allocation5 + $0x104] ss:$16 sps:$4 sm:$0xff]   ;;  %v1765_v16 = vld [vmem:[#allocation5 + $0x100] ss:$16 sps:$4 sm:$0xff]   ;;  %v2072_v23 = vpack.c.bf16 %v105_v19, %v105_v19  ;;  %v1788_v33 = vld [vmem:[#allocation5 + $0xa8] ss:$16 sps:$4 sm:$0xff]  }
  0x4b   :  { %1203 = vmatprep.mubr.bf16.mxu0 %v132_v6  ;;  %v1763_v15 = vld [vmem:[#allocation5 + $0x304] ss:$16 sps:$4 sm:$0xff]   ;;  %v1766_v17 = vld [vmem:[#allocation5 + $0x300] ss:$16 sps:$4 sm:$0xff]   ;;  %v1826_v62 = vld [vmem:[#allocation5 + $0x1ec] ss:$16 sps:$4 sm:$0xff]  }
  0x4c   :  { %1188 = vmatpush2.bf16.msra.mxu0 %v1723_v34  ;;  %1244 = vmatprep.mubr.bf16.mxu1 %v2067_v9  ;;  %v1775_v20 = vld [vmem:[#allocation5 + $0x4e4] ss:$16 sps:$4 sm:$0xff]   ;;  %v1773_v24 = vld [vmem:[#allocation5 + $0x4e0] ss:$16 sps:$4 sm:$0xff]   ;;  %v1830_v5 = vld [vmem:[#allocation5 + $0x1c8] ss:$16 sps:$4 sm:$0xff]  }
  0x4d   :  { %1229 = vmatpush2.bf16.msra.mxu1 %v1724_v35  ;;  %1189 = vmatprep.subr.bf16.mxu0 %v1725_v36  ;;  %v1781_v26 = vld [vmem:[#allocation5 + $0x4c4] ss:$16 sps:$4 sm:$0xff]   ;;  %v1779_v28 = vld [vmem:[#allocation5 + $0x4c0] ss:$16 sps:$4 sm:$0xff]   ;;  %v1796_v35 = vld [vmem:[#allocation5 + $0x8c] ss:$16 sps:$4 sm:$0xff]  }
  0x4e   :  { %1230 = vmatprep.subr.bf16.mxu1 %v1727_v37  ;;  %v1787_v30 = vld [vmem:[#allocation5 + $0x4a4] ss:$16 sps:$4 sm:$0xff]   ;;  %v1785_v32 = vld [vmem:[#allocation5 + $0x4a0] ss:$16 sps:$4 sm:$0xff]   ;;  %v1847_v18 = vld [vmem:[#allocation5 + $0x168] ss:$16 sps:$4 sm:$0xff]  }
  0x4f   :  { %v1793_v34 = vld [vmem:[#allocation5 + $0x484] ss:$16 sps:$4 sm:$0xff]   ;;  %v1834_v37 = vld [vmem:[#allocation2 + $0x20] ss:$12 sps:$4 sm:$0xff]   ;;  %v1850_v19 = vld [vmem:[#allocation5 + $0x2a8] ss:$16 sps:$4 sm:$0xff]  }
  0x50   :  { %1190 = vmatpush2.bf16.msra.mxu0 %v1729_v41  ;;  %v1833_v36 = vld [vmem:[#allocation2 + $0x8] ss:$12 sps:$4 sm:$0xff]   ;;  %v122_v39 = vrot.slane %v1834_v37, %v2061_v53  ;;  %v1791_v40 = vld [vmem:[#allocation5 + $0x480] ss:$16 sps:$4 sm:$0xff]   ;;  %v1879_v37 = vld [vmem:[#allocation5 + $0x20c] ss:$16 sps:$4 sm:$0xff]  }
  0x51   :  { %1231 = vmatpush2.bf16.msra.mxu1 %v1730_v42  ;;  %1191 = vmatprep.subr.bf16.mxu0 %v1731_v43  ;;  %v115_v38 = vrot.slane %v1833_v36, %v2061_v53  ;;  %v1794_v41 = vld [vmem:[#allocation5 + $0x88] ss:$16 sps:$4 sm:$0xff]   ;;  %v1799_v42 = vld [vmem:[#allocation5 + $0x464] ss:$16 sps:$4 sm:$0xff]   ;;  %v1802_v43 = vld [vmem:[#allocation5 + $0x6c] ss:$16 sps:$4 sm:$0xff]  }
  0x52   :  { %1232 = vmatprep.subr.bf16.mxu1 %v1733_v44  ;;  %v1811_v53 = vld [vmem:[#allocation5 + $0x424] ss:$16 sps:$4 sm:$0xff]   ;;  %v1815_v59 = vld [vmem:[#allocation5 + $0x400] ss:$16 sps:$4 sm:$0xff]   ;;  %v1874_v36 = vld [vmem:[#allocation5 + $0x4e8] ss:$16 sps:$4 sm:$0xff]  }
  0x53   :  { %v124_v44 = vcombine.high %v115_v38, %v122_v39  ;;  %v1817_v57 = vld [vmem:[#allocation5 + $0x404] ss:$16 sps:$4 sm:$0xff]   ;;  %v123_v3 = vcombine.low %v115_v38, %v122_v39  ;;  %v1882_v38 = vld [vmem:[#allocation5 + $0x4cc] ss:$16 sps:$4 sm:$0xff]   ;;  %v1877_v39 = vld [vmem:[#allocation5 + $0x208] ss:$16 sps:$4 sm:$0xff]  }
  0x54   :  { %1192 = vmatpush2.bf16.msra.mxu0 %v1735_v47  ;;  %v1797_v47 = vld [vmem:[#allocation5 + $0x460] ss:$16 sps:$4 sm:$0xff]   ;;  %v1823_v61 = vld [vmem:[#allocation5 + $0x524] ss:$16 sps:$4 sm:$0xff]  }
  0x55   :  { %1233 = vmatpush2.bf16.msra.mxu1 %v1736_v48  ;;  %1193 = vmatprep.subr.bf16.mxu0 %v1737_v49  ;;  %v2078_v45 = vpack.c.bf16 %v124_v44, %v124_v44  ;;  %v1800_v48 = vld [vmem:[#allocation5 + $0x68] ss:$16 sps:$4 sm:$0xff]   ;;  %v1805_v49 = vld [vmem:[#allocation5 + $0x444] ss:$16 sps:$4 sm:$0xff]  }
  0x56   :  { %1234 = vmatprep.subr.bf16.mxu1 %v1739_v50  ;;  %v1808_v50 = vld [vmem:[#allocation5 + $0x4c] ss:$16 sps:$4 sm:$0xff]   ;;  %v1829_v1 = vld [vmem:[#allocation5 + $0x504] ss:$16 sps:$4 sm:$0xff]   ;;  %v1886_v44 = vld [vmem:[#allocation5 + $0x4a8] ss:$16 sps:$4 sm:$0xff]  }
  0x58   :  { %1194 = vmatpush2.bf16.msra.mxu0 %v1741_v51  ;;  %v1803_v51 = vld [vmem:[#allocation5 + $0x440] ss:$16 sps:$4 sm:$0xff]  }
  0x59   :  { %1235 = vmatpush2.bf16.msra.mxu1 %v1742_v52  ;;  %1195 = vmatprep.subr.bf16.mxu0 %v1743_v54  ;;  %v1806_v52 = vld [vmem:[#allocation5 + $0x48] ss:$16 sps:$4 sm:$0xff]   ;;  %v1814_v54 = vld [vmem:[#allocation5 + $0x2c] ss:$16 sps:$4 sm:$0xff]  }
  0x5a   :  { %1236 = vmatprep.subr.bf16.mxu1 %v1745_v55  ;;  %v1809_v55 = vld [vmem:[#allocation5 + $0x420] ss:$16 sps:$4 sm:$0xff]  }
  0x5c   :  { %1196 = vmatpush2.bf16.msra.mxu0 %v1747_v63  ;;  %v1821_v63 = vld [vmem:[#allocation5 + $0x520] ss:$16 sps:$4 sm:$0xff]  }
  0x5d   :  { %1237 = vmatpush2.bf16.msra.mxu1 %v1748_v0  ;;  %1197 = vmatprep.subr.bf16.mxu0 %v1749_v2  ;;  %v1824_v0 = vld [vmem:[#allocation5 + $0x1e8] ss:$16 sps:$4 sm:$0xff]   ;;  %v1832_v2 = vld [vmem:[#allocation5 + $0x1cc] ss:$16 sps:$4 sm:$0xff]  }
  0x5e   :  { %1238 = vmatprep.subr.bf16.mxu1 %v1751_v4  ;;  %v1827_v4 = vld [vmem:[#allocation5 + $0x500] ss:$16 sps:$4 sm:$0xff]  }
  0x60   :  { %1198 = vmatpush2.bf16.msra.mxu0 %v1753_v7  ;;  %v1840_v7 = vld [vmem:[#allocation5 + $0x2ec] ss:$16 sps:$4 sm:$0xff]  }
  0x61   :  { %1239 = vmatpush2.bf16.msra.mxu1 %v1754_v8  ;;  %1199 = vmatprep.subr.bf16.mxu0 %v1755_v10  ;;  %v2082_v8 = vpack.c.bf16 %v123_v3, %v123_v3  ;;  %v1835_v10 = vld [vmem:[#allocation5 + $0x1a8] ss:$16 sps:$4 sm:$0xff]  }
  0x62   :  { %1240 = vmatprep.subr.bf16.mxu1 %v1757_v11  ;;  %v1838_v11 = vld [vmem:[#allocation5 + $0x2e8] ss:$16 sps:$4 sm:$0xff]  }
  0x63   :  { %v1919_v3 = vld [vmem:[#allocation5 + $0x328] ss:$16 sps:$4 sm:$0xff]  }
  0x64   :  { %1200 = vmatpush2.bf16.msra.mxu0 %v1759_v12  ;;  %v1843_v12 = vld [vmem:[#allocation5 + $0x18c] ss:$16 sps:$4 sm:$0xff]  }
  0x65   :  { %1241 = vmatpush2.bf16.msra.mxu1 %v1760_v13  ;;  %1201 = vmatprep.subr.bf16.mxu0 %v1761_v14  ;;  %v1846_v13 = vld [vmem:[#allocation5 + $0x2cc] ss:$16 sps:$4 sm:$0xff]   ;;  %v1841_v14 = vld [vmem:[#allocation5 + $0x188] ss:$16 sps:$4 sm:$0xff]  }
  0x66   :  { %1242 = vmatprep.subr.bf16.mxu1 %v1763_v15  ;;  %v1844_v15 = vld [vmem:[#allocation5 + $0x2c8] ss:$16 sps:$4 sm:$0xff]  }
  0x68   :  { %1202 = vmatpush2.bf16.msra.mxu0 %v1765_v16  ;;  %v1849_v16 = vld [vmem:[#allocation5 + $0x16c] ss:$16 sps:$4 sm:$0xff]  }
  0x69   :  { %1243 = vmatpush2.bf16.msra.mxu1 %v1766_v17  ;;  %1253 = vmatprep.subr.bf16.mxu0 %v1775_v20  ;;  %v1852_v17 = vld [vmem:[#allocation5 + $0x2ac] ss:$16 sps:$4 sm:$0xff]  }
  0x6a   :  { %1294 = vmatprep.subr.bf16.mxu1 %v1778_v21  ;;  %v1855_v20 = vld [vmem:[#allocation5 + $0x14c] ss:$16 sps:$4 sm:$0xff]  }
  0x6b   :  { %1204 = vmatmul.mubr.bf16.vlgmr.msra.gmra.mxu0 %v2070_v22  ;;  %v1858_v21 = vld [vmem:[#allocation5 + $0x28c] ss:$16 sps:$4 sm:$0xff]  }
  0x6c   :  { %1245 = vmatmul.mubr.bf16.vlgmr.msra.gmra.mxu1 %v2072_v23  ;;  %1254 = vmatpush1.bf16.msra.mxu0 %v1773_v24  ;;  %v1853_v24 = vld [vmem:[#allocation5 + $0x148] ss:$16 sps:$4 sm:$0xff]  }
  0x6d   :  { %1295 = vmatpush1.bf16.msra.mxu1 %v1776_v25  ;;  %1255 = vmatprep.subr.bf16.mxu0 %v1781_v26  ;;  %v1856_v25 = vld [vmem:[#allocation5 + $0x288] ss:$16 sps:$4 sm:$0xff]   ;;  %v1861_v26 = vld [vmem:[#allocation5 + $0x12c] ss:$16 sps:$4 sm:$0xff]  }
  0x6e   :  { %1296 = vmatprep.subr.bf16.mxu1 %v1784_v27  ;;  %1326 = vmatprep.mubr.bf16.mxu1 %v132_v6  ;;  %v1837_v6 = vld [vmem:[#allocation5 + $0x1ac] ss:$16 sps:$4 sm:$0xff]  }
  0x6f   :  { %1653 = vmatprep.mubr.msk.bf16.mxu0 %vm1167_vm0, %v2078_v45  ;;  %v1864_v27 = vld [vmem:[#allocation5 + $0x26c] ss:$16 sps:$4 sm:$0xff]  }
  0x70   :  { %1256 = vmatpush1.bf16.msra.mxu0 %v1779_v28  ;;  %v1859_v28 = vld [vmem:[#allocation5 + $0x128] ss:$16 sps:$4 sm:$0xff]  }
  0x71   :  { %1297 = vmatpush1.bf16.msra.mxu1 %v1782_v29  ;;  %1257 = vmatprep.subr.bf16.mxu0 %v1787_v30  ;;  %v1867_v29 = vld [vmem:[#allocation5 + $0x10c] ss:$16 sps:$4 sm:$0xff]  }
  0x72   :  { %1298 = vmatprep.subr.bf16.mxu1 %v1790_v31  ;;  %v1870_v30 = vld [vmem:[#allocation5 + $0x24c] ss:$16 sps:$4 sm:$0xff]   ;;  %v1865_v31 = vld [vmem:[#allocation5 + $0x108] ss:$16 sps:$4 sm:$0xff]  }
  0x74   :  { %1258 = vmatpush1.bf16.msra.mxu0 %v1785_v32  ;;  %v1868_v32 = vld [vmem:[#allocation5 + $0x248] ss:$16 sps:$4 sm:$0xff]  }
  0x75   :  { %1299 = vmatpush1.bf16.msra.mxu1 %v1788_v33  ;;  %1259 = vmatprep.subr.bf16.mxu0 %v1793_v34  ;;  %v1873_v33 = vld [vmem:[#allocation5 + $0x22c] ss:$16 sps:$4 sm:$0xff]  }
  0x76   :  { %1300 = vmatprep.subr.bf16.mxu1 %v1796_v35  ;;  %v1876_v34 = vld [vmem:[#allocation5 + $0x4ec] ss:$16 sps:$4 sm:$0xff]   ;;  %v1871_v35 = vld [vmem:[#allocation5 + $0x228] ss:$16 sps:$4 sm:$0xff]  }
  0x78   :  { %1260 = vmatpush1.bf16.msra.mxu0 %v1791_v40  ;;  %v1880_v40 = vld [vmem:[#allocation5 + $0x4c8] ss:$16 sps:$4 sm:$0xff]  }
  0x79   :  { %1301 = vmatpush1.bf16.msra.mxu1 %v1794_v41  ;;  %1261 = vmatprep.subr.bf16.mxu0 %v1799_v42  ;;  %v1885_v41 = vld [vmem:[#allocation5 + $0x3ec] ss:$16 sps:$4 sm:$0xff]  }
  0x7a   :  { %1302 = vmatprep.subr.bf16.mxu1 %v1802_v43  ;;  %v1888_v42 = vld [vmem:[#allocation5 + $0x4ac] ss:$16 sps:$4 sm:$0xff]   ;;  %v1883_v43 = vld [vmem:[#allocation5 + $0x3e8] ss:$16 sps:$4 sm:$0xff]  }
  0x7c   :  { %1262 = vmatpush1.bf16.msra.mxu0 %v1797_v47  ;;  %v1891_v47 = vld [vmem:[#allocation5 + $0x3cc] ss:$16 sps:$4 sm:$0xff]  }
  0x7d   :  { %1303 = vmatpush1.bf16.msra.mxu1 %v1800_v48  ;;  %1263 = vmatprep.subr.bf16.mxu0 %v1805_v49  ;;  %v1894_v48 = vld [vmem:[#allocation5 + $0x48c] ss:$16 sps:$4 sm:$0xff]   ;;  %v1892_v49 = vld [vmem:[#allocation5 + $0x488] ss:$16 sps:$4 sm:$0xff]  }
  0x7e   :  { %1304 = vmatprep.subr.bf16.mxu1 %v1808_v50  ;;  %v1897_v50 = vld [vmem:[#allocation5 + $0x3ac] ss:$16 sps:$4 sm:$0xff]  }
  0x80   :  { %1264 = vmatpush1.bf16.msra.mxu0 %v1803_v51  ;;  %v1900_v51 = vld [vmem:[#allocation5 + $0x46c] ss:$16 sps:$4 sm:$0xff]  }
  0x81   :  { %1305 = vmatpush1.bf16.msra.mxu1 %v1806_v52  ;;  %1265 = vmatprep.subr.bf16.mxu0 %v1811_v53  ;;  %v1895_v52 = vld [vmem:[#allocation5 + $0x3a8] ss:$16 sps:$4 sm:$0xff]   ;;  %v1903_v53 = vld [vmem:[#allocation5 + $0x38c] ss:$16 sps:$4 sm:$0xff]  }
  0x82   :  { %1306 = vmatprep.subr.bf16.mxu1 %v1814_v54  ;;  %v1906_v54 = vld [vmem:[#allocation5 + $0x44c] ss:$16 sps:$4 sm:$0xff]  }
  0x84   :  { %1266 = vmatpush1.bf16.msra.mxu0 %v1809_v55  ;;  %v1901_v55 = vld [vmem:[#allocation5 + $0x388] ss:$16 sps:$4 sm:$0xff]  }
  0x85   :  { %1307 = vmatpush1.bf16.msra.mxu1 %v1812_v56  ;;  %1267 = vmatprep.subr.bf16.mxu0 %v1817_v57  ;;  %v1904_v56 = vld [vmem:[#allocation5 + $0x448] ss:$16 sps:$4 sm:$0xff]   ;;  %v1909_v57 = vld [vmem:[#allocation5 + $0x36c] ss:$16 sps:$4 sm:$0xff]  }
  0x86   :  { %1308 = vmatprep.subr.bf16.mxu1 %v1820_v58  ;;  %v1912_v58 = vld [vmem:[#allocation5 + $0x42c] ss:$16 sps:$4 sm:$0xff]  }
  0x88   :  { %1268 = vmatpush1.bf16.msra.mxu0 %v1815_v59  ;;  %v1907_v59 = vld [vmem:[#allocation5 + $0x368] ss:$16 sps:$4 sm:$0xff]  }
  0x89   :  { %1309 = vmatpush1.bf16.msra.mxu1 %v1818_v60  ;;  %1281 = vmatprep.subr.bf16.mxu0 %v1823_v61  ;;  %v1910_v60 = vld [vmem:[#allocation5 + $0x428] ss:$16 sps:$4 sm:$0xff]   ;;  %v1915_v61 = vld [vmem:[#allocation5 + $0x34c] ss:$16 sps:$4 sm:$0xff]  }
  0x8a   :  { %1310 = vmatprep.subr.bf16.mxu1 %v1826_v62  ;;  %v1918_v62 = vld [vmem:[#allocation5 + $0x40c] ss:$16 sps:$4 sm:$0xff]  }
  0x8c   :  { %1282 = vmatpush2.bf16.msra.mxu0 %v1821_v63  ;;  %v1913_v63 = vld [vmem:[#allocation5 + $0x348] ss:$16 sps:$4 sm:$0xff]  }
  0x8d   :  { %1311 = vmatpush2.bf16.msra.mxu1 %v1824_v0  ;;  %1283 = vmatprep.subr.bf16.mxu0 %v1829_v1  ;;  %v1916_v0 = vld [vmem:[#allocation5 + $0x408] ss:$16 sps:$4 sm:$0xff]   ;;  %v1921_v1 = vld [vmem:[#allocation5 + $0x32c] ss:$16 sps:$4 sm:$0xff]  }
  0x8e   :  { %1312 = vmatprep.subr.bf16.mxu1 %v1832_v2  ;;  %v1924_v2 = vld [vmem:[#allocation5 + $0x52c] ss:$16 sps:$4 sm:$0xff]  }
  0x90   :  { %1284 = vmatpush2.bf16.msra.mxu0 %v1827_v4  ;;  %v1922_v4 = vld [vmem:[#allocation5 + $0x528] ss:$16 sps:$4 sm:$0xff]  }
  0x91   :  { %1313 = vmatpush2.bf16.msra.mxu1 %v1830_v5  ;;  %1335 = vmatprep.subr.bf16.mxu0 %v1840_v7  ;;  %v1927_v5 = vld [vmem:[#allocation5 + $0x30c] ss:$16 sps:$4 sm:$0xff]   ;;  %v1925_v7 = vld [vmem:[#allocation5 + $0x308] ss:$16 sps:$4 sm:$0xff]  }
  0x92   :  { %1314 = vmatprep.subr.bf16.mxu1 %v1837_v6  ;;  %v1930_v6 = vld [vmem:[#allocation5 + $0x50c] ss:$16 sps:$4 sm:$0xff]  }
  0x93   :  { %1286 = vmatmul.mubr.bf16.vlgmr.msra.gmra.mxu0 %v2082_v8 }
  0x94   :  { %1336 = vmatpush1.bf16.msra.mxu0 %v1838_v11  ;;  %1367 = vmatprep.mubr.bf16.mxu0 %v2067_v9  ;;  %v1862_v9 = vld [vmem:[#allocation5 + $0x268] ss:$16 sps:$4 sm:$0xff]   ;;  %v309_v11 = vsub.s32 0, %v2058_v46 }
  0x95   :  { %1315 = vmatpush2.bf16.msra.mxu1 %v1835_v10  ;;  %1337 = vmatprep.subr.bf16.mxu0 %v1846_v13  ;;  %v1928_v10 = vld [vmem:[#allocation5 + $0x508] ss:$16 sps:$4 sm:$0xff]   ;;  %v313_v13 = vsub.s32 1, %v2058_v46 }
  0x96   :  { %1316 = vmatprep.subr.bf16.mxu1 %v1843_v12  ;;  %v305_v12 = vld [vmem:[#allocation7] sm:$0xf] }
  0x98   :  { %1338 = vmatpush1.bf16.msra.mxu0 %v1844_v15  ;;  %v314_v15 = vrot.slane %v305_v12, %v313_v13 }
  0x99   :  { %1317 = vmatpush2.bf16.msra.mxu1 %v1841_v14  ;;  %1339 = vmatprep.subr.bf16.mxu0 %v1852_v17  ;;  %v310_v14 = vrot.slane %v305_v12, %v309_v11 }
  0x9a   :  { %1318 = vmatprep.subr.bf16.mxu1 %v1849_v16 }
  0x9c   :  { %1340 = vmatpush1.bf16.msra.mxu0 %v1850_v19 }
  0x9d   :  { %1319 = vmatpush2.bf16.msra.mxu1 %v1847_v18  ;;  %1341 = vmatprep.subr.bf16.mxu0 %v1858_v21 }
  0x9e   :  { %1320 = vmatprep.subr.bf16.mxu1 %v1855_v20 }
  0xa0   :  { %1342 = vmatpush1.bf16.msra.mxu0 %v1856_v25 }
  0xa1   :  { %1321 = vmatpush2.bf16.msra.mxu1 %v1853_v24  ;;  %1343 = vmatprep.subr.bf16.mxu0 %v1864_v27 }
  0xa2   :  { %1322 = vmatprep.subr.bf16.mxu1 %v1861_v26 }
  0xa4   :  { %1344 = vmatpush1.bf16.msra.mxu0 %v1862_v9 }
  0xa5   :  { %1323 = vmatpush2.bf16.msra.mxu1 %v1859_v28  ;;  %1345 = vmatprep.subr.bf16.mxu0 %v1870_v30 }
  0xa6   :  { %1324 = vmatprep.subr.bf16.mxu1 %v1867_v29 }
  0xa8   :  { %1346 = vmatpush1.bf16.msra.mxu0 %v1868_v32 }
  0xa9   :  { %1325 = vmatpush2.bf16.msra.mxu1 %v1865_v31  ;;  %1347 = vmatprep.subr.bf16.mxu0 %v1873_v33 }
  0xaa   :  { %1376 = vmatprep.subr.bf16.mxu1 %v1876_v34 }
  0xac   :  { %1327 = vmatmul.mubr.bf16.vlgmr.msra.gmra.mxu1 %v2070_v22  ;;  %1348 = vmatpush1.bf16.msra.mxu0 %v1871_v35  ;;  %v1889_v22 = vld [vmem:[#allocation5 + $0x3c8] ss:$16 sps:$4 sm:$0xff]  }
  0xad   :  { %1377 = vmatpush1.bf16.msra.mxu1 %v1874_v36  ;;  %1349 = vmatprep.subr.bf16.mxu0 %v1879_v37 }
  0xae   :  { %1378 = vmatprep.subr.bf16.mxu1 %v1882_v38  ;;  %1654 = vmatprep.mubr.msk.bf16.mxu1 %vm1167_vm0, %v2078_v45  ;;  %v1898_v45 = vld [vmem:[#allocation5 + $0x468] ss:$16 sps:$4 sm:$0xff]   ;;  %v317_v38 = vsub.s32 2, %v2058_v46 }
  0xb0   :  { %1350 = vmatpush1.bf16.msra.mxu0 %v1877_v39  ;;  %v321_v39 = vsub.s32 3, %v2058_v46 }
  0xb1   :  { %1379 = vmatpush1.bf16.msra.mxu1 %v1880_v40  ;;  %1351 = vmatprep.subr.bf16.mxu0 %v1885_v41  ;;  %v318_v40 = vrot.slane %v305_v12, %v317_v38  ;;  %v2025_v41 = vmov 1966171168  }
  0xb2   :  { %1380 = vmatprep.subr.bf16.mxu1 %v1888_v42  ;;  %v1428_v42 = vunpack.c.l.s4 %v2025_v41 }
  0xb4   :  { %1352 = vmatpush2.bf16.msra.mxu0 %v1883_v43  ;;  %v322_v43 = vrot.slane %v305_v12, %v321_v39 }
  0xb5   :  { %1381 = vmatpush1.bf16.msra.mxu1 %v1886_v44  ;;  %1353 = vmatprep.subr.bf16.mxu0 %v1891_v47 }
  0xb6   :  { %1382 = vmatprep.subr.bf16.mxu1 %v1894_v48 }
  0xb8   :  { %1354 = vmatpush2.bf16.msra.mxu0 %v1889_v22  ;;  %v1429_v22 = vunpack.c.0.s8 %v1428_v42 }
  0xb9   :  { %1383 = vmatpush1.bf16.msra.mxu1 %v1892_v49  ;;  %1355 = vmatprep.subr.bf16.mxu0 %v1897_v50 }
  0xba   :  { %1384 = vmatprep.subr.bf16.mxu1 %v1900_v51 }
  0xbc   :  { %1356 = vmatpush2.bf16.msra.mxu0 %v1895_v52 }
  0xbd   :  { %1385 = vmatpush1.bf16.msra.mxu1 %v1898_v45  ;;  %1357 = vmatprep.subr.bf16.mxu0 %v1903_v53 }
  0xbe   :  { %1386 = vmatprep.subr.bf16.mxu1 %v1906_v54 }
  0xc0   :  { %1358 = vmatpush2.bf16.msra.mxu0 %v1901_v55  ;;  %v1432_v55 = vsub.s32 %v1429_v22, %v2058_v46 }
  0xc1   :  { %1387 = vmatpush1.bf16.msra.mxu1 %v1904_v56  ;;  %1359 = vmatprep.subr.bf16.mxu0 %v1909_v57 }
  0xc2   :  { %1388 = vmatprep.subr.bf16.mxu1 %v1912_v58 }
  0xc4   :  { %1360 = vmatpush2.bf16.msra.mxu0 %v1907_v59 }
  0xc5   :  { %1389 = vmatpush1.bf16.msra.mxu1 %v1910_v60  ;;  %1361 = vmatprep.subr.bf16.mxu0 %v1915_v61 }
  0xc6   :  { %1390 = vmatprep.subr.bf16.mxu1 %v1918_v62 }
  0xc8   :  { %1362 = vmatpush2.bf16.msra.mxu0 %v1913_v63 }
  0xc9   :  { %1391 = vmatpush1.bf16.msra.mxu1 %v1916_v0  ;;  %1363 = vmatprep.subr.bf16.mxu0 %v1921_v1 }
  0xca   :  { %1404 = vmatprep.subr.bf16.mxu1 %v1924_v2 }
  0xcc   :  { %1364 = vmatpush2.bf16.msra.mxu0 %v1919_v3 }
  0xcd   :  { %1405 = vmatpush2.bf16.msra.mxu1 %v1922_v4  ;;  %1365 = vmatprep.subr.bf16.mxu0 %v1927_v5 }
  0xce   :  { %1406 = vmatprep.subr.bf16.mxu1 %v1930_v6 }
  0xd0   :  { %1366 = vmatpush2.bf16.msra.mxu0 %v1925_v7 }
  0xd1   :  { %1407 = vmatpush2.bf16.msra.mxu1 %v1928_v10 }
  0xd3   :  { %1368 = vmatmul.mubr.bf16.vlgmr.msra.gmra.mxu0 %v2072_v23 }
  0xd4   :  { %1409 = vmatmul.mubr.bf16.vlgmr.msra.gmra.mxu1 %v2082_v8 }
 0x12b   :  { %v1205_v16 = vpop.f32.mrf.mxu0 }
 0x12c   :  { %v1246_v17 = vpop.f32.mrf.mxu1  ;;  %v1206_v18 = vadd.f32 %v1205_v16, %v310_v14 }
 0x12d   :  { %v1207_v19 = vpop.f32.mrf.mxu0 }
 0x12e   :  { %v1248_v20 = vpop.f32.mrf.mxu1  ;;  %v1247_v21 = vadd.f32 %v1246_v17, %v1206_v18  ;;  %v1208_v24 = vadd.f32 %v1207_v19, %v314_v15 }
 0x12f   :  { %v1209_v25 = vpop.f32.mrf.mxu0 }
 0x130   :  { %v1250_v26 = vpop.f32.mrf.mxu1  ;;  %v1249_v27 = vadd.f32 %v1248_v20, %v1208_v24 }
 0x131   :  { %v1210_v23 = vpop.f32.mrf.mxu0 }
 0x132   :  { %v1251_v28 = vpop.f32.mrf.mxu1 }
 0x153   :  { %v1287_v8 = vpop.f32.mrf.mxu0 }
 0x154   :  { %v1288_v9 = vadd.f32 %v1287_v8, %v1247_v21 }
 0x155   :  { %v1289_v29 = vpop.f32.mrf.mxu0 }
 0x156   :  { %v1290_v30 = vadd.f32 %v1289_v29, %v1249_v27 }
 0x157   :  { %v1291_v31 = vpop.f32.mrf.mxu0 }
 0x158   :  { %v1655_v32 = vpack.c.bf16 %v1290_v30, %v1288_v9 }
 0x159   :  { %v1292_v33 = vpop.f32.mrf.mxu0 }
 0x15a   :  { %v1433_v61 = vrot.slane %v1655_v32, %v1432_v55 }
 0x16c   :  { %v1328_v34 = vpop.f32.mrf.mxu1 }
 0x16d   :  { %v1329_v44 = vadd.f32 %v1328_v34, %v318_v40 }
 0x16e   :  { %v1330_v35 = vpop.f32.mrf.mxu1 }
 0x16f   :  { %v1331_v49 = vadd.f32 %v1330_v35, %v322_v43 }
 0x170   :  { %v1332_v36 = vpop.f32.mrf.mxu1 }
 0x172   :  { %v1333_v37 = vpop.f32.mrf.mxu1 }
 0x193   :  { %v1369_v47 = vpop.f32.mrf.mxu0 }
 0x194   :  { %v1410_v48 = vpop.f32.mrf.mxu1  ;;  %v1370_v50 = vadd.f32 %v1369_v47, %v1329_v44 }
 0x195   :  { %v1371_v51 = vpop.f32.mrf.mxu0 }
 0x196   :  { %v1412_v52 = vpop.f32.mrf.mxu1  ;;  %v1372_v45 = vadd.f32 %v1371_v51, %v1331_v49  ;;  %v1411_v56 = vadd.f32 %v1410_v48, %v1370_v50 }
 0x197   :  { %v1373_v53 = vpop.f32.mrf.mxu0 }
 0x198   :  { %v1414_v54 = vpop.f32.mrf.mxu1  ;;  %v1413_v57 = vadd.f32 %v1412_v52, %v1372_v45 }
 0x199   :  { %v1374_v58 = vpop.f32.mrf.mxu0 }
 0x19a   :  { %v1415_v59 = vpop.f32.mrf.mxu1  ;;  %v1656_v60 = vpack.c.bf16 %v1413_v57, %v1411_v56 }
 0x19c   :  { %v1440_v62 = vrot.slane %v1656_v60, %v1432_v55 }
 0x19e   :  { %v1441_v63 = vcombine.low %v1433_v61, %v1440_v62  ;;  %v1442_v0 = vcombine.high %v1433_v61, %v1440_v62 }
 0x1a0   :  { %v1449_v1 = vrot.slane %v1441_v63, %v1432_v55  ;;  %v1456_v2 = vrot.slane %v1442_v0, %v1432_v55  ;;  %1657 = vst.sshfl [vmem:[#allocation8] sm:$0x55 pattern:$0x73625140] %v1441_v63 }
 0x1a1   :  { %1658 = vst.sshfl [vmem:[#allocation8 + $0x4] sm:$0x55 pattern:$0x73625140] %v1442_v0 }
 0x1a2   :  { %v1457_v3 = vcombine.high %v1449_v1, %v1449_v1  ;;  %v1458_v4 = vcombine.high %v1456_v2, %v1456_v2 }
 0x1a4   :  { %1465 = vst [vmem:[#allocation8 + $0x8] sm:$0xf] %v1457_v3  ;;  %1466 = vst [vmem:[#allocation8 + $0xc] sm:$0xf] %v1458_v4 }
 0x1a5   :  { %1471 = vsyncadd [#allocation4], 192  ;;  %s2026_s0 = smov [#allocation8]  }
 0x1a6   :  { %s1472_s2 = sshll.u32 %s2026_s0, 4  ;;  %s1473_s2 = int_to_ptr.vmem [resolvable:$true] %s1472_s2 }
 0x1a7   :  { %s1991_s4 = scalar_lea.vmem %s1473_s2, 64  ;;  %s1995_s5 = scalar_lea.vmem %s1473_s2, 256 }
 0x1a8   :  { %p1992_p1 = scmp.ne.s32.totalorder %s1473_s2, %s1991_s4  ;;  %p1996_p2 = scmp.lt.s32.totalorder %s1473_s2, %s1473_s2 }
 0x1a9   :  { %p1997_p3 = scmp.lt.s32.totalorder %s1995_s5, %s1991_s4 }
 0x1ab   :  { %p1998_p4 = por %p1997_p3, %p1996_p2 }
 0x1ad   :  { %p1999_p5 = pnand %p1998_p4, %p1992_p1 }
 0x1af   :  { %2002 = shalt.err (!%p1999_p5)
}
 0x1b0   :  { %s2027_s6 = smov 64   ;;  %s2028_s7 = smov 4  }
 0x1b1   :  { %1478 = dma.vmem_to_hbm [thread:$0]  %s1473_s2, 64, %s2102_s3, [#allocation4], %s2027_s6, %s2027_s6, %s2028_s7  }
 0x1b2   :  { %2015 = dma.done.wait [#allocation4], 256  }
 0x1b3   :  { %2016 = vsyncadd [#allocation4], 4294967040 }
 0x1b4   :  { %1482 = vsyncpa [#allocation3], 1 }
 0x1b5   :  { %1483 = vsyncpa [#allocation6], 1 }
 0x1b6   :  { %1484 = vsyncpa [#allocation4], 1 }

</bundles_post_ra>
